<compile_context>
chip_gen: v7x
topology: tpu7x:2x2x1
jax: 0.10.0
libtpu: 0.0.40
codegen_flags: <defaults>
</compile_context>

<pallas_src>
import functools

import jax
import jax.numpy as jnp
from jax.experimental import pallas as pl
from jax.experimental.pallas import tpu as pltpu

LANE = 128  # channel padding / lane width


def _round_up(x, m):
    return ((x + m - 1) // m) * m


def _pad_to(a, shape):
    pads = [(0, s - d) for d, s in zip(a.shape, shape)]
    return jnp.pad(a, pads)


def gcn_layer_kernel(adj_ref, m_ref, w_ref, b_ref, out_ref, acc_ref, *,
                     apply_relu, tk, m_resident):
    """One GCN layer tile: acc += A_strip @ M_block; finalize: act((acc @ W) + b)."""
    k = pl.program_id(1)

    @pl.when(k == 0)
    def _():
        acc_ref[...] = jnp.zeros_like(acc_ref)

    if m_resident:
        if m_ref.shape[0] == tk:
            m_blk = m_ref[...]                       # single reduction step
        else:
            start = pl.multiple_of(k * tk, tk)       # slice the resident slab
            m_blk = m_ref[pl.ds(start, tk), :]
    else:
        m_blk = m_ref[...]                           # streamed (tk, LANE) block

    # Aggregation over source nodes (bf16 operands, f32 accumulation on the MXU).
    acc_ref[...] += jnp.dot(adj_ref[...], m_blk, preferred_element_type=jnp.float32)

    @pl.when(k == pl.num_programs(1) - 1)
    def _():
        # Fused post-projection + bias (+ relu) on the finished row strip.
        # bf16 x bf16 projection (v5e-friendly); operands are bf16-degraded upstream.
        y = jnp.dot(acc_ref[...].astype(jnp.bfloat16), w_ref[...],
                    preferred_element_type=jnp.float32)
        y = y + b_ref[...]
        if apply_relu:
            y = jnp.maximum(y, 0.0)
        out_ref[...] = y.astype(out_ref.dtype)


def _vmem_limit(tm, tk, npad, m_resident):
    """Scoped VMEM from the actual buffer sum (double-buffered) + Mosaic headroom."""
    a_strip = tm * tk * 2                               # bf16 A_hat strip
    m_block = (npad if m_resident else tk) * LANE * 2   # bf16 features / h1
    out_block = tm * LANE * 4                           # <= f32 output strip
    w_block = LANE * LANE * 2
    b_block = 8 * LANE * 4
    acc = tm * LANE * 4
    total = 2 * (a_strip + m_block + out_block + w_block + b_block) + acc
    total = int(total * 1.25) + (2 << 20)               # internal-scratch headroom
    return min(max(total, 8 << 20), 48 << 20)           # stay well below v7x 64 MiB


def _gcn_layer(adj_bf16, m_bf16, w_pad, b_pad, *, relu, tm, tk, m_resident,
               out_dtype):
    npad = adj_bf16.shape[0]
    grid = (npad // tm, npad // tk)

    if m_resident:
        # Constant block index -> the whole (npad, LANE) slab is DMA'd exactly once.
        m_spec = pl.BlockSpec((npad, LANE), lambda i, k: (0, 0))
        m_stream_bytes = npad * LANE * 2
    else:
        # Streamed: re-fetched once per row tile (only used when npad > 16K).
        m_spec = pl.BlockSpec((tk, LANE), lambda i, k: (k, 0))
        m_stream_bytes = (npad // tm) * npad * LANE * 2

    kernel = functools.partial(gcn_layer_kernel, apply_relu=relu, tk=tk,
                               m_resident=m_resident)

    flops = 2 * npad * npad * LANE + 2 * npad * LANE * LANE
    bytes_accessed = (npad * npad * 2 + m_stream_bytes
                      + npad * LANE * jnp.dtype(out_dtype).itemsize
                      + LANE * LANE * 2 + LANE * 4)

    return pl.pallas_call(
        kernel,
        out_shape=jax.ShapeDtypeStruct((npad, LANE), out_dtype),
        grid_spec=pltpu.PrefetchScalarGridSpec(
            num_scalar_prefetch=0,
            grid=grid,
            in_specs=[
                pl.BlockSpec((tm, tk), lambda i, k: (i, k)),      # A_hat row strip
                m_spec,                                           # node features / h1
                pl.BlockSpec((LANE, LANE), lambda i, k: (0, 0)),  # projection weight
                pl.BlockSpec((1, LANE), lambda i, k: (0, 0)),     # bias row
            ],
            out_specs=pl.BlockSpec((tm, LANE), lambda i, k: (i, 0)),
            scratch_shapes=[pltpu.VMEM((tm, LANE), jnp.float32)],
        ),
        compiler_params=pltpu.CompilerParams(
            dimension_semantics=("parallel", "arbitrary"),
            vmem_limit_bytes=_vmem_limit(tm, tk, npad, m_resident),
        ),
        cost_estimate=pl.CostEstimate(flops=flops, transcendentals=0,
                                      bytes_accessed=bytes_accessed),
    )(adj_bf16, m_bf16, w_pad, b_pad)


def normalized_adjacency(edge_index, num_nodes, num_nodes_padded=None,
                         out_dtype=jnp.float32):
    """Dense symmetric-normalized adjacency (no self loops), matching PyG gcn_norm.

    Scatters the normalized edge weights directly into the pre-padded array (f32
    accumulation for duplicate edges) and casts once -> a single O(N^2) cast pass.
    """
    npad = num_nodes if num_nodes_padded is None else num_nodes_padded
    src = edge_index[0]
    dst = edge_index[1]
    ones = jnp.ones(src.shape[0], dtype=jnp.float32)
    deg = jnp.zeros((num_nodes,), jnp.float32).at[dst].add(ones)
    deg_inv_sqrt = jnp.where(deg > 0, jax.lax.rsqrt(deg), 0.0)
    norm = deg_inv_sqrt[src] * deg_inv_sqrt[dst]
    adj = jnp.zeros((npad, npad), jnp.float32).at[dst, src].add(norm)
    return adj.astype(out_dtype)


def _choose_tiles(n):
    """Returns (npad, tm, tk, m_resident)."""
    npad_min = _round_up(max(n, 1), LANE)
    if npad_min <= 2048:
        # Single src tile; split rows into 2 tiles so both v7x TensorCores get work.
        npad = npad_min
        tm = max(npad // 2, 8)
        return npad, tm, npad, True
    # Large graphs: 1024 x 2048 bf16 A_hat strips (4 MiB) amortize the ~0.35 us
    # per-grid-step overhead; double-buffered VMEM stays ~<25 MiB (v7x-safe).
    tm, tk = 1024, 2048
    npad = _round_up(n, tk)
    m_resident = npad <= 16384  # whole (npad, 128) bf16 feature slab <= 4 MiB
    return npad, tm, tk, m_resident


def gcn_simple_forward(x, edge_index, params):
    n = x.shape[0]
    w1t, b1, w2t, b2 = params
    c0, c1 = w1t.shape
    c2 = w2t.shape[1]
    assert c0 <= LANE and c1 <= LANE and c2 <= LANE, "channels must be <= 128"

    npad, tm, tk, m_resident = _choose_tiles(n)

    # Glue (O(N^2) scatter + single cast) in plain JAX; dominant streams in bf16.
    adj_pad = normalized_adjacency(edge_index, n, npad, out_dtype=jnp.bfloat16)
    x_pad = _pad_to(x, (npad, LANE)).astype(jnp.bfloat16)

    # Weights pre-transposed (C_in, C_out), zero-padded to 128x128 bf16 (v5e MXU is
    # multi-pass for f32 matmul; operands are already bf16-degraded). Biases f32.
    w1p = _pad_to(w1t, (LANE, LANE)).astype(jnp.bfloat16)
    b1p = _pad_to(b1.reshape(1, -1), (1, LANE)).astype(jnp.float32)
    w2p = _pad_to(w2t, (LANE, LANE)).astype(jnp.bfloat16)
    b2p = _pad_to(b2.reshape(1, -1), (1, LANE)).astype(jnp.float32)

    # Layer 1: h1 = relu((A @ X) @ W1 + b1); stored bf16 so layer 2 streams half the
    # bytes. Dropout(p=0.6, training=False) is identity in eval mode.
    # (Padded rows of h1 may hold relu(b1) != 0; harmless since the corresponding
    #  adjacency columns are zero — do not reuse h1 beyond the first n rows.)
    h1 = _gcn_layer(adj_pad, x_pad, w1p, b1p, relu=True, tm=tm, tk=tk,
                    m_resident=m_resident, out_dtype=jnp.bfloat16)

    # Layer 2: out = (A @ h1) @ W2 + b2 (associativity; widths equal after padding).
    # TODO(synk): A_hat streams once per layer; fusing both layers over one A_hat
    # pass is blocked by the full h1 dependency (layer 2 needs every source row).
    out = _gcn_layer(adj_pad, h1, w2p, b2p, relu=False, tm=tm, tk=tk,
                     m_resident=m_resident, out_dtype=jnp.float32)

    return out[:n, :c2]


def gcn_simple_reference(x, edge_index, params):
    """Pure-JAX f32 reference for validation."""
    adj = normalized_adjacency(edge_index, x.shape[0])
    w1t, b1, w2t, b2 = params
    h1 = jnp.maximum(adj @ (x @ w1t) + b1, 0.0)
    return adj @ (h1 @ w2t) + b2


def init_params(key, hidden_channels):
    c0, c1, c2 = hidden_channels
    k1, k2, k3, k4 = jax.random.split(key, 4)
    # Deterministic synthetic init (Glorot-ish); stored pre-transposed (C_in, C_out).
    w1t = jax.random.normal(k1, (c0, c1), jnp.float32) * (1.0 / jnp.sqrt(c0))
    b1 = jax.random.normal(k2, (c1,), jnp.float32) * 0.01
    w2t = jax.random.normal(k3, (c1, c2), jnp.float32) * (1.0 / jnp.sqrt(c1))
    b2 = jax.random.normal(k4, (c2,), jnp.float32) * 0.01
    return (w1t, b1, w2t, b2)


if __name__ == "__main__":
    key = jax.random.PRNGKey(0)
    kx, kp = jax.random.split(key)

    num_nodes = 16
    hidden_channels = [8, 32, 8]

    x = jax.random.normal(kx, (num_nodes, hidden_channels[0]), jnp.float32)

    # Small deterministic graph: bidirectional ring (no self loops).
    idx = jnp.arange(num_nodes, dtype=jnp.int32)
    nxt = (idx + 1) % num_nodes
    src = jnp.concatenate([idx, nxt])
    dst = jnp.concatenate([nxt, idx])
    edge_index = jnp.stack([src, dst], axis=0)  # (2, E)

    params = init_params(kp, hidden_channels)

    out = gcn_simple_forward(x, edge_index, params)
    jax.block_until_ready(out)
    assert out.shape == (num_nodes, hidden_channels[2])

    # Validate against the f32 reference (bf16 adjacency/feature/weight streams =>
    # loose tolerance).
    ref = gcn_simple_reference(x, edge_index, params)
    max_err = float(jnp.max(jnp.abs(out - ref)))
    assert max_err < 1e-1, f"max abs err {max_err}"

    print("KERNEL_OK")
</pallas_src>

<mosaic_0001>
module attributes {stable_mosaic.version = 11 : i64} {
  func.func @gcn_layer_kernel(%arg0: i32, %arg1: i32, %arg2: memref<64x128xbf16, #tpu.memory_space<vmem>>, %arg3: memref<128x128xbf16, #tpu.memory_space<vmem>>, %arg4: memref<128x128xbf16, #tpu.memory_space<vmem>>, %arg5: memref<1x128xf32, #tpu.memory_space<vmem>>, %arg6: memref<64x128xbf16, #tpu.memory_space<vmem>>, %arg7: memref<64x128xf32, #tpu.memory_space<vmem>>) attributes {dimension_semantics = [#tpu.dimension_semantics<parallel>, #tpu.dimension_semantics<arbitrary>], iteration_bounds = array<i64: 2, 1>, scalar_prefetch = 0 : i64, scratch_operands = 1 : i64, tpu.core_type = #tpu.core_type<tc>, window_params = [{transform_indices = @transform_0, window_bounds = array<i64: 64, 128>}, {pipeline_mode = #tpu.pipeline_mode<synchronous>, transform_indices = @transform_1, window_bounds = array<i64: 128, 128>}, {pipeline_mode = #tpu.pipeline_mode<synchronous>, transform_indices = @transform_2, window_bounds = array<i64: 128, 128>}, {pipeline_mode = #tpu.pipeline_mode<synchronous>, transform_indices = @transform_3, window_bounds = array<i64: 1, 128>}, {transform_indices = @transform_4, window_bounds = array<i64: 64, 128>}]} {
    %c0_i32 = arith.constant 0 : i32
    %0 = arith.cmpi eq, %arg1, %c0_i32 : i32
    %1 = arith.extui %0 : i1 to i32
    %c0_i32_0 = arith.constant 0 : i32
    %2 = arith.cmpi ne, %1, %c0_i32_0 : i32
    scf.if %2 {
      %cst_10 = arith.constant 0.000000e+00 : f32
      %12 = vector.broadcast %cst_10 : f32 to vector<64x128xf32>
      %c0_11 = arith.constant 0 : index
      %c0_12 = arith.constant 0 : index
      %13 = vector.load %arg7[%c0_11, %c0_12] : memref<64x128xf32, #tpu.memory_space<vmem>>, vector<64x128xf32>
      tpu.vector_store %arg7[%c0_11, %c0_12], %12 {strides = array<i32>} : memref<64x128xf32, #tpu.memory_space<vmem>>, vector<64x128xf32>,
    } else {
    }
    %c0 = arith.constant 0 : index
    %c0_1 = arith.constant 0 : index
    %3 = vector.load %arg3[%c0, %c0_1] : memref<128x128xbf16, #tpu.memory_space<vmem>>, vector<128x128xbf16>
    %c0_2 = arith.constant 0 : index
    %c0_3 = arith.constant 0 : index
    %4 = vector.load %arg7[%c0_2, %c0_3] : memref<64x128xf32, #tpu.memory_space<vmem>>, vector<64x128xf32>
    %c0_4 = arith.constant 0 : index
    %c0_5 = arith.constant 0 : index
    %5 = vector.load %arg2[%c0_4, %c0_5] : memref<64x128xbf16, #tpu.memory_space<vmem>>, vector<64x128xbf16>
    %cst = arith.constant dense<0.000000e+00> : vector<64x128xf32>
    %6 = tpu.matmul %5, %3, %cst {dimension_numbers = #tpu.dot_dimension_numbers<[1], [0], [0], [1], [0, 0, 1, 1], [], []>} : vector<64x128xbf16>, vector<128x128xbf16>, vector<64x128xf32> -> vector<64x128xf32>
    %7 = arith.addf %4, %6 : vector<64x128xf32>
    %c0_6 = arith.constant 0 : index
    %c0_7 = arith.constant 0 : index
    %8 = vector.load %arg7[%c0_6, %c0_7] : memref<64x128xf32, #tpu.memory_space<vmem>>, vector<64x128xf32>
    tpu.vector_store %arg7[%c0_6, %c0_7], %7 {strides = array<i32>} : memref<64x128xf32, #tpu.memory_space<vmem>>, vector<64x128xf32>,
    %c0_i32_8 = arith.constant 0 : i32
    %9 = arith.cmpi eq, %arg1, %c0_i32_8 : i32
    %10 = arith.extui %9 : i1 to i32
    %c0_i32_9 = arith.constant 0 : i32
    %11 = arith.cmpi ne, %10, %c0_i32_9 : i32
    scf.if %11 {
      %c0_10 = arith.constant 0 : index
      %c0_11 = arith.constant 0 : index
      %12 = vector.load %arg7[%c0_10, %c0_11] : memref<64x128xf32, #tpu.memory_space<vmem>>, vector<64x128xf32>
      %13 = arith.truncf %12 : vector<64x128xf32> to vector<64x128xbf16>
      %c0_12 = arith.constant 0 : index
      %c0_13 = arith.constant 0 : index
      %14 = vector.load %arg4[%c0_12, %c0_13] : memref<128x128xbf16, #tpu.memory_space<vmem>>, vector<128x128xbf16>
      %cst_14 = arith.constant dense<0.000000e+00> : vector<64x128xf32>
      %15 = tpu.matmul %13, %14, %cst_14 {dimension_numbers = #tpu.dot_dimension_numbers<[1], [0], [0], [1], [0, 0, 1, 1], [], []>} : vector<64x128xbf16>, vector<128x128xbf16>, vector<64x128xf32> -> vector<64x128xf32>
      %c0_15 = arith.constant 0 : index
      %c0_16 = arith.constant 0 : index
      %16 = vector.load %arg5[%c0_15, %c0_16] : memref<1x128xf32, #tpu.memory_space<vmem>>, vector<1x128xf32>
      %17 = vector.broadcast %16 : vector<1x128xf32> to vector<64x128xf32>
      %18 = arith.addf %15, %17 : vector<64x128xf32>
      %cst_17 = arith.constant 0.000000e+00 : f32
      %19 = vector.broadcast %cst_17 : f32 to vector<64x128xf32>
      %20 = arith.maximumf %18, %19 : vector<64x128xf32>
      %21 = arith.truncf %20 : vector<64x128xf32> to vector<64x128xbf16>
      %c0_18 = arith.constant 0 : index
      %c0_19 = arith.constant 0 : index
      %22 = vector.load %arg6[%c0_18, %c0_19] : memref<64x128xbf16, #tpu.memory_space<vmem>>, vector<64x128xbf16>
      tpu.vector_store %arg6[%c0_18, %c0_19], %21 {strides = array<i32>} : memref<64x128xbf16, #tpu.memory_space<vmem>>, vector<64x128xbf16>,
    } else {
    }
    return
  }
  func.func @transform_0(%arg0: i32, %arg1: i32) -> (i32, i32) {
    %c0_i32 = arith.constant 0 : i32
    return %arg0, %arg1 : i32, i32
  }
  func.func @transform_1(%arg0: i32, %arg1: i32) -> (i32, i32) {
    %c0_i32 = arith.constant 0 : i32
    %c0_i32_0 = arith.constant 0 : i32
    %c0_i32_1 = arith.constant 0 : i32
    return %c0_i32, %c0_i32_0 : i32, i32
  }
  func.func @transform_2(%arg0: i32, %arg1: i32) -> (i32, i32) {
    %c0_i32 = arith.constant 0 : i32
    %c0_i32_0 = arith.constant 0 : i32
    %c0_i32_1 = arith.constant 0 : i32
    return %c0_i32, %c0_i32_0 : i32, i32
  }
  func.func @transform_3(%arg0: i32, %arg1: i32) -> (i32, i32) {
    %c0_i32 = arith.constant 0 : i32
    %c0_i32_0 = arith.constant 0 : i32
    %c0_i32_1 = arith.constant 0 : i32
    return %c0_i32, %c0_i32_0 : i32, i32
  }
  func.func @transform_4(%arg0: i32, %arg1: i32) -> (i32, i32) {
    %c0_i32 = arith.constant 0 : i32
    %c0_i32_0 = arith.constant 0 : i32
    return %arg0, %c0_i32 : i32, i32
  }
}

</mosaic_0001>

<bundles_post_ra>
// kernel: tpu_custom_call.1
= control target key start
LH: loop header
LB: loop body
LE: loop exit
PB: predicated region body
PF: predicated region fallthrough
CT: control target
= control target key end

     0   :  { %9 = vsyncpa [#allocation4], 0  ;;  %s1519_s0 = inlined_call_operand.hbm [shape: bf16[128,128], index: 0, kind: input, shape index: {}]   ;;  %s1520_s1 = inlined_call_operand.hbm [shape: bf16[128,128], index: 1, kind: input, shape index: {}]   ;;  %s1521_s2 = inlined_call_operand.hbm [shape: bf16[128,128], index: 2, kind: input, shape index: {}]   ;;  %s1522_s3 = inlined_call_operand.vmem [shape: f32[1,128], index: 3, kind: input, shape index: {}]   ;;  %s1523_s4 = inlined_call_operand.hbm [shape: bf16[128,128], index: 4, kind: output, shape index: {}]  }
   0x1   :  { %11 = vsyncpa [#allocation4 + $0x1], 0 }
   0x2   :  { %12 = vsyncpa [#allocation7], 0 }
   0x3   :  { %13 = vsyncpa [#allocation5], 0 }
   0x4   :  { %15 = vsyncpa [#allocation5 + $0x1], 0  ;;  %s1242_s15 = smov 0   ;;  %s1244_s16 = smov 0  }
   0x5   :  { %s1246_s17 = smov 0   ;;  %s1248_s18 = smov 0  }
   0x6   :  { %s1250_s19 = smov 0   ;;  %s1252_s20 = smov 0  }
   0x7 LB: > { %s775_s21 = sadd.s32 4294967295, %s1207_s20   ;;  %s776_s22 = sadd.s32 4294967294, %s1207_s20   ;;  %s1207_s20 = sphi %s1252_s20, %s21_s20   ;;  %s1203_s19 = sphi %s1250_s19, %s1545_s19   ;;  %s1199_s18 = sphi %s1248_s18, %s1544_s18   ;;  %s1195_s17 = sphi %s1246_s17, %s1543_s17   ;;  %s1191_s16 = sphi %s1244_s16, %s1542_s16   ;;  %s1187_s15 = sphi %s1242_s15, %s1541_s15  }
   0x8   : > { %p55_p0 = scmp.ne.s32.totalorder %s1191_s16, %s1187_s15  ;;  %p1276_p1 = scmp.eq.s32.totalorder %s775_s21, 0 }
   0x9   : > { %p1280_p2 = scmp.eq.s32.totalorder %s775_s21, 1  ;;  %p148_p3 = scmp.eq.s32.totalorder %s776_s22, 1 }
   0xa   : > { %s1528_s23 = scalar_select %p1276_p1, 1, 0 }
   0xb   : > { %p1286_p4 = por %p1276_p1, %p55_p0  ;;  %p777_p5 = scmp.ge.s32.totalorder %s1207_s20, 1 }
   0xc   : > { %p1291_p6 = por %p148_p3, %p55_p0  ;;  %p155_p7 = scmp.lt.s32.totalorder %s1207_s20, 3 }
   0xd   : > { %s1530_s25 = scalar_select %p1286_p4, 1, 0 }
   0xe   : > { %s1531_s26 = scalar_select %p1291_p6, 1, 0 }
   0xf   : > { %p1296_p8 = pnand %p777_p5, %p155_p7  ;;  %s1209_s28 = smov [#allocation6]  }
  0x10   : > { %s167_s29 = sshll.u32 %s1209_s28, 4  ;;  %s1210_s5 = smov [#allocation8]   ;;  %s1300_s29 = int_to_ptr.vmem [resolvable:$true] %s167_s29 }
  0x11   : > { %p940_p9 = pneg %p1296_p8  ;;  %s180_s6 = sshll.u32 %s1210_s5, 4  ;;  %s1311_s6 = int_to_ptr.vmem [resolvable:$true] %s180_s6 }
  0x12   : > { %s1035_s9 = scalar_lea.hbm %s1520_s1, 1024 }
  0x13   : > { %p1307_p11 = pnand %p940_p9, %p1276_p1  ;;  %p1036_p12 = scmp.ne.s32.totalorder %s1520_s1, %s1035_s9 }
  0x14   : > { %p1042_p5 = scmp.lt.u32.totalorder %s1035_s9, %s1520_s1 }
  0x15   : > { %p1037_p13 = pneg %p1307_p11 }
  0x17   : > { %p1038_p0 = pnand %p1037_p13, %p1036_p12 }
  0x19   : > { %p1039_p3 = pneg %p1038_p0 }
  0x1b   : > { %p1044_p7 = pnand %p1042_p5, %p1039_p3 }
  0x1d   : > { %1047 = shalt.err (!%p1044_p7)
}
  0x1e   : > { %s1048_s14 = scalar_lea.vmem %s1300_s29, 1024  ;;  %p1056_p1 = scmp.lt.s32.totalorder %s1300_s29, %s1300_s29 }
  0x1f   : > { %p1049_p9 = scmp.ne.s32.totalorder %s1300_s29, %s1048_s14  ;;  %p1057_p12 = scmp.lt.s32.totalorder %s1048_s14, %s1048_s14 }
  0x21   : > { %p1051_p10 = pnand %p1049_p9, %p1037_p13  ;;  %p1058_p0 = por %p1057_p12, %p1056_p1 }
  0x23   : > { %p1052_p6 = pneg %p1051_p10 }
  0x25   : > { %p1059_p4 = pnand %p1058_p0, %p1052_p6 }
  0x27   : > { %1062 = shalt.err (!%p1059_p4)
}
  0x28   : > { %s1211_s21 = smov 64   ;;  %s1212_s22 = smov 4  }
  0x29   : > { %943 = dma.hbm_to_vmem [thread:$0]  (!%p1307_p11), %s1520_s1, 1024, %s1300_s29, [#allocation7], %s1211_s21, %s1211_s21, %s1212_s22  }
  0x2a   : > { %s1063_s9 = scalar_lea.hbm %s1521_s2, 1024 }
  0x2b   : > { %p1064_p1 = scmp.ne.s32.totalorder %s1521_s2, %s1063_s9  ;;  %p1070_p10 = scmp.lt.u32.totalorder %s1063_s9, %s1521_s2 }
  0x2d   : > { %p1066_p4 = pnand %p1064_p1, %p1037_p13 }
  0x2f   : > { %p1067_p6 = pneg %p1066_p4 }
  0x31   : > { %p1072_p3 = pnand %p1070_p10, %p1067_p6 }
  0x33   : > { %1075 = shalt.err (!%p1072_p3)
}
  0x34   : > { %s1076_s29 = scalar_lea.vmem %s1311_s6, 1024  ;;  %p1084_p12 = scmp.lt.s32.totalorder %s1311_s6, %s1311_s6 }
  0x35   : > { %p1077_p5 = scmp.ne.s32.totalorder %s1311_s6, %s1076_s29  ;;  %p1085_p0 = scmp.lt.s32.totalorder %s1076_s29, %s1076_s29 }
  0x37   : > { %p1079_p7 = pnand %p1077_p5, %p1037_p13  ;;  %p1086_p1 = por %p1085_p0, %p1084_p12 }
  0x39   : > { %p1080_p9 = pneg %p1079_p7 }
  0x3b   : > { %p1087_p4 = pnand %p1086_p1, %p1080_p9 }
  0x3d   : > { %1090 = shalt.err (!%p1087_p4)
}
  0x3e   : > { %946 = dma.hbm_to_vmem [thread:$0]  (!%p1307_p11), %s1521_s2, 1024, %s1311_s6, [#allocation7], %s1211_s21, %s1211_s21, %s1212_s22  }
  0x3f   : > { %s33_s30 = sadd.s32 1, %s1203_s19  ;;  %s42_s5 = sadd.s32 1, %s1195_s17 }
  0x40   : > { %p35_p13 = scmp.ge.s32.totalorder %s33_s30, 2  ;;  %p49_p6 = scmp.ne.s32.totalorder %s1195_s17, %s1191_s16 }
  0x41   : > { %p50_p10 = scmp.eq.s32.totalorder %s1207_s20, 0  ;;  %p957_p3 = scmp.lt.s32.totalorder %s1207_s20, 2 }
  0x42   : > { %s1547_s30 = smov (%p35_p13, %s33_s30), 0  ;;  %p1381_p7 = por %p1280_p2, %p49_p6 }
  0x43   : > { %p51_p5 = por %p50_p10, %p49_p6  ;;  %s37_s8 = ssub.s32 %s1203_s19, %s1547_s30 }
  0x44   : > { %s1534_s7 = scalar_select %p1381_p7, 1, 0 }
  0x45   : > { %s197_s9 = sand.u32 1, %s1195_s17   ;;  %p40_p9 = scmp.eq.s32.totalorder %s37_s8, 0 }
  0x46   : > { %s781_s6 = sshll.u32 %s197_s9, 5  ;;  %s823_s10 = sshll.u32 %s1203_s19, 9 }
  0x47   : > { %s1390_s11 = scalar_select %p40_p9, %s1195_s17, %s42_s5  }
  0x48   : > { %s1395_s29 = scalar_lea.hbm %s1519_s0, %s823_s10  ;;  %s201_s24 = scalar_lea.vmem [#allocation3], %s781_s6 }
  0x49   : > { %s209_s14 = sshll.u32 %s201_s24, 4  ;;  %p1399_p2 = pnand %p957_p3, %p51_p5  ;;  %s1403_s14 = int_to_ptr.vmem [resolvable:$true] %s209_s14 }
  0x4a   : > { %s1405_s5 = scalar_lea.sflag [#allocation4], %s197_s9  ;;  %s1091_s8 = scalar_lea.hbm %s1395_s29, 512 }
  0x4b   : > { %p1092_p11 = scmp.ne.s32.totalorder %s1395_s29, %s1091_s8  ;;  %p1093_p12 = pneg %p1399_p2 }
  0x4c   : > { %s1096_s12 = scalar_lea.hbm %s1519_s0, 1024  ;;  %p1097_p4 = scmp.lt.u32.totalorder %s1395_s29, %s1519_s0 }
  0x4d   : > { %p1094_p0 = pnand %p1093_p12, %p1092_p11  ;;  %p1098_p13 = scmp.lt.u32.totalorder %s1096_s12, %s1091_s8 }
  0x4e   : > { %p1100_p10 = scmp.lt.u32.totalorder %s1091_s8, %s1395_s29 }
  0x4f   : > { %p1095_p1 = pneg %p1094_p0  ;;  %p1099_p6 = por %p1098_p13, %p1097_p4 }
  0x51   : > { %p1101_p3 = por %p1100_p10, %p1099_p6 }
  0x53   : > { %p1102_p5 = pnand %p1101_p3, %p1095_p1 }
  0x55   : > { %1105 = shalt.err (!%p1102_p5)
}
  0x56   : > { %s1106_s9 = scalar_lea.vmem %s1403_s14, 512  ;;  %s1213_s6 = smov [#allocation3]  }
  0x57   : > { %p1107_p9 = scmp.ne.s32.totalorder %s1403_s14, %s1106_s9  ;;  %s1111_s10 = sshll.u32 %s1213_s6, 4  ;;  %s1112_s10 = int_to_ptr.vmem [resolvable:$false] %s1111_s10 }
  0x58   : > { %s1113_s13 = scalar_lea.vmem %s1112_s10, 1024  ;;  %p1114_p7 = scmp.lt.s32.totalorder %s1403_s14, %s1112_s10 }
  0x59   : > { %p1109_p11 = pnand %p1107_p9, %p1093_p12  ;;  %p1115_p4 = scmp.lt.s32.totalorder %s1113_s13, %s1106_s9 }
  0x5b   : > { %p1110_p0 = pneg %p1109_p11  ;;  %p1116_p13 = por %p1115_p4, %p1114_p7 }
  0x5d   : > { %p1117_p6 = pnand %p1116_p13, %p1110_p0 }
  0x5f   : > { %1120 = shalt.err (!%p1117_p6)
}
  0x60   : > { %950 = dma.hbm_to_vmem [thread:$0]  (!%p1399_p2), %s1395_s29, 512, %s1403_s14, %s1405_s5, %s1211_s21, %s1211_s21, %s1212_s22  }
  0x61   : > { %221 = sbr.rel (%p1296_p8) target bundleno = 603 (0x25b), region = 36  ;;  %s1439_s8 = sand.u32 (!%p1296_p8), 1, %s1191_s16  }
  0x62   : > { %s785_s12 = sshll.u32 (!%p1296_p8), %s1439_s8, 5  ;;  %s224_s24 = scalar_lea.sflag (!%p1296_p8), [#allocation4], %s1439_s8 }
  0x63   : > { %s1445_s28 = scalar_lea.vmem (!%p1296_p8), [#allocation3], %s785_s12  ;;  %p1536_p7 = scmp.ne.s32.totalorder (!%p1296_p8), %s1530_s25, 0 }
  0x68   : > { %1174 = dma.done.wait (%p1536_p7), %s224_s24, 512  }
  0x69   : > { %1176 = vsyncadd (%p1536_p7), %s224_s24, 4294966784  ;;  %p1537_p2 = scmp.ne.s32.totalorder %s1528_s23, 0 }
  0x6b   : > { %1178 = dma.done.wait (%p1537_p2), [#allocation7], 2048  }
  0x6c   : > { %1180 = vsyncadd (%p1537_p2), [#allocation7], 4294965248  ;;  %v1015_v0 = vld [vmem:[#allocation6] sm:$0xff]   ;;  %v1016_v1 = vld [vmem:[#allocation6 + $0x8] sm:$0xff]   ;;  %s259_s27 = scalar_lea.vmem [#allocation9], %s785_s12  ;;  %s832_s22 = sshll.u32 %s1199_s18, 9 }
  0x6d   : > { %880 = vmatprep.subr.bf16.mxu0 %v1015_v0  ;;  %v1017_v2 = vld [vmem:[#allocation6 + $0x10] sm:$0xff]   ;;  %v1018_v3 = vld [vmem:[#allocation6 + $0x18] sm:$0xff]   ;;  %v1023_v4 = vld [vmem:[%s1445_s28] sm:$0xff]   ;;  %s673_s21 = sshll.u32 %s259_s27, 4  ;;  %s1470_s5 = scalar_lea.hbm %s1523_s4, %s832_s22  ;;  %s1465_s21 = int_to_ptr.vmem [resolvable:$true] %s673_s21 }
  0x6e   : > { %881 = vmatpush3.bf16.msra.mxu0 %v1015_v0  ;;  %896 = vmatprep.mubr.bf16.mxu0 %v1023_v4  ;;  %v1019_v5 = vld [vmem:[#allocation6 + $0x20] sm:$0xff]   ;;  %v1028_v7 = vld [vmem:[#allocation8 + $0x8] sm:$0xff]   ;;  %v1029_v9 = vld [vmem:[#allocation8 + $0x10] sm:$0xff]   ;;  %s660_s9 = scalar_lea.sflag [#allocation5], %s1439_s8  ;;  %s1121_s18 = scalar_lea.vmem %s1465_s21, 512 }
  0x6f   : > { %882 = vmatprep.subr.bf16.mxu0 %v1016_v1  ;;  %v1027_v6 = vld [vmem:[#allocation8] sm:$0xff]   ;;  %v1020_v8 = vld [vmem:[#allocation6 + $0x28] sm:$0xff]   ;;  %v1021_v10 = vld [vmem:[#allocation6 + $0x30] sm:$0xff]   ;;  %p1122_p8 = scmp.ne.s32.totalorder %s1465_s21, %s1121_s18  ;;  %p1538_p12 = scmp.ne.s32.totalorder %s1534_s7, 0 }
  0x70   : > { %904 = vmatprep.subr.bf16.mxu1 %v1027_v6  ;;  %v1030_v11 = vld [vmem:[#allocation8 + $0x18] sm:$0xff]   ;;  %v1031_v13 = vld [vmem:[#allocation8 + $0x20] sm:$0xff]   ;;  %v1032_v14 = vld [vmem:[#allocation8 + $0x28] sm:$0xff]   ;;  %s1214_s6 = smov [#allocation9]  }
  0x71   : > { %905 = vmatpush3.bf16.msra.mxu1 %v1027_v6  ;;  %v1022_v12 = vld [vmem:[#allocation6 + $0x38] sm:$0xff]   ;;  %v1024_v15 = vld [vmem:[%s1445_s28 + $0x8] sm:$0xff]   ;;  %v1025_v16 = vld [vmem:[%s1445_s28 + $0x10] sm:$0xff]   ;;  %p1123_p1 = pnand %p1122_p8, %p1538_p12  ;;  %s1125_s10 = sshll.u32 %s1214_s6, 4  ;;  %s1126_s10 = int_to_ptr.vmem [resolvable:$false] %s1125_s10 }
  0x72   : > { %883 = vmatpush3.bf16.msra.mxu0 %v1016_v1  ;;  %906 = vmatprep.subr.bf16.mxu1 %v1028_v7  ;;  %v1033_v17 = vld [vmem:[#allocation8 + $0x30] sm:$0xff]   ;;  %v1026_v18 = vld [vmem:[%s1445_s28 + $0x18] sm:$0xff]   ;;  %v801_v32 = vld [vmem:[%s1522_s3] ss:$0 sm:$0xff]  ;;  %s1127_s13 = scalar_lea.vmem %s1126_s10, 1024  ;;  %p1128_p3 = scmp.lt.s32.totalorder %s1465_s21, %s1126_s10 }
  0x73   : > { %884 = vmatprep.subr.bf16.mxu0 %v1017_v2  ;;  %v1034_v19 = vld [vmem:[#allocation8 + $0x38] sm:$0xff]   ;;  %p1124_p10 = pneg %p1123_p1  ;;  %p1129_p5 = scmp.lt.s32.totalorder %s1127_s13, %s1121_s18 }
  0x75   : > { %907 = vmatpush3.bf16.msra.mxu1 %v1028_v7  ;;  %p1130_p9 = por %p1129_p5, %p1128_p3 }
  0x76   : > { %885 = vmatpush3.bf16.msra.mxu0 %v1017_v2  ;;  %908 = vmatprep.subr.bf16.mxu1 %v1029_v9 }
  0x77   : > { %886 = vmatprep.subr.bf16.mxu0 %v1018_v3  ;;  %p1131_p11 = pnand %p1130_p9, %p1124_p10 }
  0x79   : > { %909 = vmatpush3.bf16.msra.mxu1 %v1029_v9 }
  0x7a   : > { %887 = vmatpush3.bf16.msra.mxu0 %v1018_v3  ;;  %910 = vmatprep.subr.bf16.mxu1 %v1030_v11 }
  0x7b   : > { %888 = vmatprep.subr.bf16.mxu0 %v1019_v5 }
  0x7d   : > { %911 = vmatpush3.bf16.msra.mxu1 %v1030_v11 }
  0x7e   : > { %889 = vmatpush3.bf16.msra.mxu0 %v1019_v5  ;;  %912 = vmatprep.subr.bf16.mxu1 %v1031_v13 }
  0x7f   : > { %890 = vmatprep.subr.bf16.mxu0 %v1020_v8 }
  0x81   : > { %913 = vmatpush3.bf16.msra.mxu1 %v1031_v13 }
  0x82   : > { %891 = vmatpush3.bf16.msra.mxu0 %v1020_v8  ;;  %914 = vmatprep.subr.bf16.mxu1 %v1032_v14 }
  0x83   : > { %892 = vmatprep.subr.bf16.mxu0 %v1021_v10 }
  0x85   : > { %915 = vmatpush3.bf16.msra.mxu1 %v1032_v14 }
  0x86   : > { %893 = vmatpush3.bf16.msra.mxu0 %v1021_v10  ;;  %916 = vmatprep.subr.bf16.mxu1 %v1033_v17 }
  0x87   : > { %894 = vmatprep.subr.bf16.mxu0 %v1022_v12 }
  0x89   : > { %917 = vmatpush3.bf16.msra.mxu1 %v1033_v17 }
  0x8a   : > { %895 = vmatpush3.bf16.msra.mxu0 %v1022_v12  ;;  %918 = vmatprep.subr.bf16.mxu1 %v1034_v19 }
  0x8d   : > { %897 = vmatmul.mubr.bf16.vlgmr.msra.gmra.mrb[0].mxu0 %v1024_v15  ;;  %919 = vmatpush3.bf16.msra.mxu1 %v1034_v19 }
  0x8e   : > { %900 = vmatprep.mubr.bf16.mxu0 %v1025_v16 }
  0x95   : > { %901 = vmatmul.mubr.bf16.gmra.mrb[4].mxu0 %v1026_v18 }
 0x160   : > { %v898_v20 = vpop.f32.mrb[0].mxu0 }
 0x161   : > { %v413_v21 = vpop.f32.mrb[1].mxu0 }
 0x162   : > { %v899_v22 = vpop.f32.mrb[2].mxu0 }
 0x163   : > { %v472_v23 = vpack.c.bf16 %v899_v22, %v898_v20  ;;  %v416_v24 = vpop.f32.mrb[3].mxu0 }
 0x164   : > { %v471_v25 = vpack.c.bf16 %v416_v24, %v413_v21 }
 0x166   : > { %920 = vmatprep.mubr.bf16.mxu1 %v471_v25 }
 0x167   : > { %921 = vmatmul.mubr.bf16.vlgmr.msra.gmra.mrb[0].mxu1 %v472_v23 }
 0x168   : > { %v902_v26 = vpop.f32.mrb[4].mxu0 }
 0x169   : > { %v429_v27 = vpop.f32.mrb[5].mxu0 }
 0x16a   : > { %v903_v28 = vpop.f32.mrb[6].mxu0 }
 0x16b   : > { %v474_v29 = vpack.c.bf16 %v903_v28, %v902_v26  ;;  %v432_v30 = vpop.f32.mrb[7].mxu0 }
 0x16c   : > { %v473_v31 = vpack.c.bf16 %v432_v30, %v429_v27 }
 0x16e   : > { %924 = vmatprep.mubr.bf16.mxu1 %v473_v31 }
 0x16f   : > { %925 = vmatmul.mubr.bf16.gmra.mrb[4].mxu1 %v474_v29 }
 0x23a   : > { %v922_v33 = vpop.f32.mrb[0].mxu1 }
 0x23b   : > { %v589_v34 = vadd.f32 %v922_v33, %v801_v32  ;;  %v580_v35 = vpop.f32.mrb[1].mxu1 }
 0x23c   : > { %v581_v36 = vadd.f32 %v801_v32, %v580_v35  ;;  %v923_v37 = vpop.f32.mrb[2].mxu1 }
 0x23d   : > { %v592_v38 = vadd.f32 %v923_v37, %v801_v32  ;;  %v583_v39 = vpop.f32.mrb[3].mxu1  ;;  %v613_v41 = vmax.f32 %v589_v34, 0.0 }
 0x23e   : > { %v584_v40 = vadd.f32 %v801_v32, %v583_v39  ;;  %v611_v43 = vmax.f32 %v581_v36, 0.0 }
 0x23f   : > { %v614_v42 = vmax.f32 %v592_v38, 0.0 }
 0x240   : > { %v612_v44 = vmax.f32 %v584_v40, 0.0 }
 0x241   : > { %v841_v45 = vpack.c.bf16 %v614_v42, %v613_v41 }
 0x242   : > { %v836_v46 = vpack.c.bf16 %v612_v44, %v611_v43  ;;  %v926_v47 = vpop.f32.mrb[4].mxu1 }
 0x243   : > { %853 = vst [vmem:[%s259_s27 + $0x8] sm:$0xff] %v841_v45   ;;  %v605_v48 = vadd.f32 %v926_v47, %v801_v32  ;;  %v596_v49 = vpop.f32.mrb[5].mxu1 }
 0x244   : > { %837 = vst [vmem:[%s259_s27] sm:$0xff] %v836_v46   ;;  %v597_v50 = vadd.f32 %v801_v32, %v596_v49  ;;  %v927_v51 = vpop.f32.mrb[6].mxu1 }
 0x245   : > { %v608_v52 = vadd.f32 %v927_v51, %v801_v32  ;;  %v599_v53 = vpop.f32.mrb[7].mxu1  ;;  %v617_v55 = vmax.f32 %v605_v48, 0.0 }
 0x246   : > { %v600_v54 = vadd.f32 %v801_v32, %v599_v53  ;;  %v615_v57 = vmax.f32 %v597_v50, 0.0 }
 0x247   : > { %v618_v56 = vmax.f32 %v608_v52, 0.0 }
 0x248   : > { %v616_v58 = vmax.f32 %v600_v54, 0.0 }
 0x249   : > { %v851_v59 = vpack.c.bf16 %v618_v56, %v617_v55 }
 0x24a   : > { %v846_v60 = vpack.c.bf16 %v616_v58, %v615_v57 }
 0x24b   : > { %855 = vst [vmem:[%s259_s27 + $0x18] sm:$0xff] %v851_v59  }
 0x24c   : > { %854 = vst [vmem:[%s259_s27 + $0x10] sm:$0xff] %v846_v60  }
 0x24d   : > { %1134 = shalt.err (!%p1131_p11)
}
 0x24e   : > { %s1135_s12 = scalar_lea.hbm %s1470_s5, 512  ;;  %s1139_s23 = scalar_lea.hbm %s1523_s4, 1024 }
 0x24f   : > { %p1136_p0 = scmp.ne.s32.totalorder %s1470_s5, %s1135_s12  ;;  %p1140_p6 = scmp.lt.u32.totalorder %s1470_s5, %s1523_s4 }
 0x250   : > { %p1141_p7 = scmp.lt.u32.totalorder %s1139_s23, %s1135_s12  ;;  %p1143_p8 = scmp.lt.u32.totalorder %s1135_s12, %s1470_s5 }
 0x251   : > { %p1137_p4 = pnand %p1136_p0, %p1538_p12 }
 0x252   : > { %p1142_p2 = por %p1141_p7, %p1140_p6 }
 0x253   : > { %p1138_p13 = pneg %p1137_p4 }
 0x254   : > { %p1144_p1 = por %p1143_p8, %p1142_p2 }
 0x256   : > { %p1145_p10 = pnand %p1144_p1, %p1138_p13 }
 0x258   : > { %1148 = shalt.err (!%p1145_p10)
}
 0x259   : > { %s1215_s22 = smov 64   ;;  %s1216_s29 = smov 4  }
 0x25a   : > { %938 = dma.vmem_to_hbm [thread:$0]  (%p1538_p12), %s1465_s21, 512, %s1470_s5, %s660_s9, %s1215_s22, %s1215_s22, %s1216_s29  }
 0x25b PF: > { %s688_s14 = sand.u32 1, %s1187_s15   ;;  %p1539_p3 = scmp.ne.s32.totalorder %s1531_s26, 0 }
 0x25c   : > { %p1540_p5 = scmp.ge.s32.totalorder %s1207_s20, 2  ;;  %s689_s18 = scalar_lea.sflag [#allocation5], %s688_s14 }
 0x25e   : > { %p952_p9 = pnand %p1540_p5, %p1539_p3 }
 0x260   : > { %1182 = dma.done.wait (!%p952_p9), %s689_s18, 512  }
 0x261   : > { %1184 = vsyncadd (!%p952_p9), %s689_s18, 4294966784  ;;  %s21_s20 = sadd.s32 1, %s1207_s20   ;;  %s1541_s15 = smov %s1191_s16 }
 0x262   : > { %p18_p11 = scmp.ge.s32.totalorder %s21_s20, 4   ;;  %s1542_s16 = smov %s1195_s17 }
 0x263   : > { %s1543_s17 = smov %s1390_s11  ;;  %s1544_s18 = smov %s1203_s19 }
 0x264   : > { %s1545_s19 = smov %s1547_s30  ;;  %20 = sbr.rel (!%p18_p11) target bundleno = 7 (0x7), region = 97 }
 0x26b   :  { %694 = vsyncpa [#allocation4], 1 }
 0x26c   :  { %696 = vsyncpa [#allocation4 + $0x1], 1 }
 0x26d   :  { %697 = vsyncpa [#allocation7], 1 }
 0x26e   :  { %698 = vsyncpa [#allocation5], 1 }
 0x26f   :  { %700 = vsyncpa [#allocation5 + $0x1], 1 }

</bundles_post_ra>
